<compile_context>
chip_gen: v7x
topology: tpu7x:2x2x1
jax: 0.10.0
libtpu: 0.0.40
codegen_flags: <defaults>
</compile_context>

<pallas_src>
import math

import jax
import jax.numpy as jnp
from jax.experimental import pallas as pl
from jax.experimental.pallas import tpu as pltpu

_NEG_SLOPE = 0.2   # LeakyReLU negative slope
_LANE = 128
_SUBLANE = 8


def _round_up(n, m):
    return ((n + m - 1) // m) * m


# ---------------------------------------------------------------------------
# Kernels
# ---------------------------------------------------------------------------

def _cond_block_kernel_full(x_ref, e_ref, w_in_ref, w_cond_ref, w_out_ref,
                            b_mix_ref, b_out_ref, o_ref):
    """Per-timestep condition: two input matmuls + gate + output matmul + LeakyReLU."""
    x = x_ref[...]
    mix = (jnp.dot(x, w_in_ref[...], preferred_element_type=jnp.float32)
           + jnp.dot(e_ref[...], w_cond_ref[...], preferred_element_type=jnp.float32)
           + b_mix_ref[...])                              # b_in + b_cond, pre-summed
    gated = jnp.tanh(mix) * jax.nn.sigmoid(mix)           # EUP path
    gated = gated.astype(w_out_ref.dtype)                 # consistent MXU input dtype
    mix_out = (jnp.dot(gated, w_out_ref[...], preferred_element_type=jnp.float32)
               + b_out_ref[...])
    pre = mix_out + x.astype(jnp.float32)                 # residual
    o_ref[...] = jnp.where(pre >= 0.0, pre, _NEG_SLOPE * pre).astype(o_ref.dtype)


def _cond_block_kernel_bcast(x_ref, cond_ref, w_in_ref, w_out_ref, b_out_ref, o_ref):
    """Per-utterance condition: x_cond (+biases) is precomputed, added as a (1,C) row."""
    x = x_ref[...]
    mix = (jnp.dot(x, w_in_ref[...], preferred_element_type=jnp.float32)
           + cond_ref[...])                               # broadcasts over the row tile
    gated = jnp.tanh(mix) * jax.nn.sigmoid(mix)
    gated = gated.astype(w_out_ref.dtype)
    mix_out = (jnp.dot(gated, w_out_ref[...], preferred_element_type=jnp.float32)
               + b_out_ref[...])
    pre = mix_out + x.astype(jnp.float32)
    o_ref[...] = jnp.where(pre >= 0.0, pre, _NEG_SLOPE * pre).astype(o_ref.dtype)


# ---------------------------------------------------------------------------
# Wrapper helpers
# ---------------------------------------------------------------------------

def _fold_weight(w, g):
    """Block-diagonal expansion: kron(I_g, w) so folded rows [r0|r1|...|r_{g-1}] map
    to [r0@W | r1@W | ...]."""
    if g == 1:
        return w
    c = w.shape[0]
    eye = jnp.eye(g, dtype=w.dtype)
    return jnp.einsum("ij,kl->ikjl", eye, w).reshape(g * c, g * c)


def _fold_bias(b, g):
    return jnp.tile(b, g) if g > 1 else b


def _choose_tm(n_rows, row_bytes, target_bytes=1 << 20, prefer_split=True):
    """Row tile: ~target_bytes per input stream, 8-aligned, never larger than the
    array, and split into >=2 grid steps when possible (v7x megacore)."""
    if n_rows <= _SUBLANE:
        return max(n_rows, 1)                 # single full block (== array dim)
    tm = max(_SUBLANE, (target_bytes // max(row_bytes, 1)) // _SUBLANE * _SUBLANE)
    tm = min(tm, (n_rows // _SUBLANE) * _SUBLANE)
    if prefer_split and n_rows >= 2 * _SUBLANE and pl.cdiv(n_rows, tm) < 2:
        tm = _round_up(pl.cdiv(n_rows, 2), _SUBLANE)
    return tm


# ---------------------------------------------------------------------------
# Public entry point
# ---------------------------------------------------------------------------

def condition_block(x, timbre_emb, w_in, b_in, w_cond, b_cond, w_out, b_out):
    """ConditionBlock forward (channels-last).

    x:          (B, T, C)
    timbre_emb: (B, T, C) or (B, 1, C)   (time dim broadcast like the PyTorch add)
    w_*:        (C, C)   conv1x1 weight as (in_ch, out_ch)  == torch weight[:, :, 0].T
    b_*:        (C,)
    returns     (B, T, C)
    """
    B, T, C = x.shape
    Te = timbre_emb.shape[1]
    if Te not in (1, T):
        raise ValueError(f"timbre_emb time dim {Te} not broadcastable to {T}")
    if timbre_emb.dtype != x.dtype:
        timbre_emb = timbre_emb.astype(x.dtype)

    broadcast_cond = (Te == 1 and T > 1)

    # Lane folding: pack G rows into one lane-dense 128-wide row when C < 128 and the
    # row count divides cleanly (avoids any padding pass).
    g = 1
    if C < _LANE and _LANE % C == 0:
        g_try = _LANE // C
        if broadcast_cond:
            if T % g_try == 0:
                g = g_try
        else:
            if (B * T) % g_try == 0:
                g = g_try
    Cf = g * C

    f32 = jnp.float32
    itemsize = x.dtype.itemsize
    w_bytes = w_in.dtype.itemsize

    w_in_f = _fold_weight(w_in, g)
    w_out_f = _fold_weight(w_out, g)
    b_out_f = _fold_bias(b_out.astype(f32), g).reshape(1, Cf)

    compiler_params = dict(vmem_limit_bytes=32 * 1024 * 1024)

    if not broadcast_cond:
        # ---- per-timestep condition: flatten (B, T, C) -> (M, Cf) row stream ----
        M = (B * T) // g
        xf = x.reshape(M, Cf)
        ef = timbre_emb.reshape(M, Cf)
        w_cond_f = _fold_weight(w_cond, g)
        b_mix_f = _fold_bias((b_in + b_cond).astype(f32), g).reshape(1, Cf)

        tm = _choose_tm(M, Cf * itemsize)
        grid = (pl.cdiv(M, tm),)              # ragged last block handled by Pallas

        row_spec = pl.BlockSpec((tm, Cf), lambda i: (i, 0))
        w_spec = pl.BlockSpec((Cf, Cf), lambda i: (0, 0))
        b_spec = pl.BlockSpec((1, Cf), lambda i: (0, 0))

        cost = pl.CostEstimate(
            flops=3 * 2 * M * Cf * Cf,
            transcendentals=2 * M * Cf,
            bytes_accessed=3 * M * Cf * itemsize + 3 * Cf * Cf * w_bytes + 2 * Cf * 4,
        )

        out = pl.pallas_call(
            _cond_block_kernel_full,
            out_shape=jax.ShapeDtypeStruct((M, Cf), x.dtype),
            grid=grid,
            in_specs=[row_spec, row_spec, w_spec, w_spec, w_spec, b_spec, b_spec],
            out_specs=row_spec,
            compiler_params=pltpu.CompilerParams(
                dimension_semantics=("parallel",), **compiler_params),
            cost_estimate=cost,
        )(xf, ef, w_in_f, w_cond_f, w_out_f, b_mix_f, b_out_f)
        return out.reshape(B, T, C)

    # ---- per-utterance condition: never materialize the (B,1,C)->(B,T,C) broadcast.
    # Precompute x_cond (+ both biases) once per batch row in plain JAX (tiny B*C work).
    Tr = T // g
    xr = x.reshape(B, Tr, Cf)
    cond = (jnp.einsum("bc,co->bo", timbre_emb[:, 0, :].astype(f32), w_cond.astype(f32))
            + b_cond.astype(f32) + b_in.astype(f32))               # (B, C)
    cond = jnp.tile(cond, (1, g)).reshape(B, 1, Cf)                # (B, 1, Cf) f32

    tm = _choose_tm(Tr, Cf * itemsize, prefer_split=(B < 2))
    grid = (B, pl.cdiv(Tr, tm))

    row_spec = pl.BlockSpec((None, tm, Cf), lambda b, i: (b, i, 0))
    cond_spec = pl.BlockSpec((None, 1, Cf), lambda b, i: (b, 0, 0))
    w_spec = pl.BlockSpec((Cf, Cf), lambda b, i: (0, 0))
    b_spec = pl.BlockSpec((1, Cf), lambda b, i: (0, 0))

    cost = pl.CostEstimate(
        flops=2 * 2 * B * Tr * Cf * Cf,
        transcendentals=2 * B * Tr * Cf,
        bytes_accessed=(2 * B * Tr * Cf * itemsize + 2 * Cf * Cf * w_bytes
                        + B * Cf * 4 + Cf * 4),
    )

    out = pl.pallas_call(
        _cond_block_kernel_bcast,
        out_shape=jax.ShapeDtypeStruct((B, Tr, Cf), x.dtype),
        grid=grid,
        in_specs=[row_spec, cond_spec, w_spec, w_spec, b_spec],
        out_specs=row_spec,
        compiler_params=pltpu.CompilerParams(
            dimension_semantics=("parallel", "parallel"), **compiler_params),
        cost_estimate=cost,
    )(xr, cond, w_in_f, w_out_f, b_out_f)
    return out.reshape(B, T, C)


# ---------------------------------------------------------------------------
# Reference & self-test
# ---------------------------------------------------------------------------

def _reference(x, timbre_emb, w_in, b_in, w_cond, b_cond, w_out, b_out):
    if timbre_emb.shape[1] != x.shape[1]:
        timbre_emb = jnp.broadcast_to(timbre_emb, x.shape)
    x_in = jnp.einsum("btc,co->bto", x, w_in) + b_in
    x_cond = jnp.einsum("btc,co->bto", timbre_emb, w_cond) + b_cond
    mix = x_in + x_cond
    gated = jnp.tanh(mix) * jax.nn.sigmoid(mix)
    mix_out = jnp.einsum("btc,co->bto", gated, w_out) + b_out
    pre = mix_out + x
    return jnp.where(pre >= 0.0, pre, _NEG_SLOPE * pre)


if __name__ == "__main__":
    key = jax.random.PRNGKey(0)
    C = 32
    keys = jax.random.split(key, 10)

    # Deterministic nn.Conv1d(k=1)-style init: U(-1/sqrt(in_ch), 1/sqrt(in_ch)).
    bound = 1.0 / math.sqrt(C)

    def u(k, shape):
        return jax.random.uniform(k, shape, jnp.float32, -bound, bound)

    w_in, b_in = u(keys[0], (C, C)), u(keys[1], (C,))
    w_cond, b_cond = u(keys[2], (C, C)), u(keys[3], (C,))
    w_out, b_out = u(keys[4], (C, C)), u(keys[5], (C,))
    params = (w_in, b_in, w_cond, b_cond, w_out, b_out)

    ok = True

    # (a) per-timestep condition, lane-folded (C=32 -> 128 lanes), aligned tiles.
    B, T = 2, 16
    x = jax.random.normal(keys[6], (B, T, C), jnp.float32)
    e = jax.random.normal(keys[7], (B, T, C), jnp.float32)
    out = jax.block_until_ready(condition_block(x, e, *params))
    ref = _reference(x, e, *params)
    ok &= bool(jnp.allclose(out, ref, atol=1e-5, rtol=1e-5))

    # (b) per-utterance condition (B, 1, C): broadcast handled without materialization.
    e1 = jax.random.normal(keys[8], (B, 1, C), jnp.float32)
    out = jax.block_until_ready(condition_block(x, e1, *params))
    ref = _reference(x, e1, *params)
    ok &= bool(jnp.allclose(out, ref, atol=1e-5, rtol=1e-5))

    # (c) ragged row count (T=50): exercises cdiv grid + masked last block (no pad).
    B2, T2 = 2, 50
    x2 = jax.random.normal(keys[9], (B2, T2, C), jnp.float32)
    e2 = jax.random.normal(keys[6], (B2, T2, C), jnp.float32)
    out = jax.block_until_ready(condition_block(x2, e2, *params))
    ref = _reference(x2, e2, *params)
    ok &= bool(jnp.allclose(out, ref, atol=1e-5, rtol=1e-5))

    assert ok, "Pallas ConditionBlock does not match reference"
    print("KERNEL_OK")
</pallas_src>

<mosaic_0001>
module attributes {stable_mosaic.version = 11 : i64} {
  func.func @_cond_block_kernel_full(%arg0: i32, %arg1: memref<8x128xf32, #tpu.memory_space<vmem>>, %arg2: memref<8x128xf32, #tpu.memory_space<vmem>>, %arg3: memref<128x128xf32, #tpu.memory_space<vmem>>, %arg4: memref<128x128xf32, #tpu.memory_space<vmem>>, %arg5: memref<128x128xf32, #tpu.memory_space<vmem>>, %arg6: memref<1x128xf32, #tpu.memory_space<vmem>>, %arg7: memref<1x128xf32, #tpu.memory_space<vmem>>, %arg8: memref<8x128xf32, #tpu.memory_space<vmem>>) attributes {dimension_semantics = [#tpu.dimension_semantics<parallel>], iteration_bounds = array<i64: 1>, scalar_prefetch = 0 : i64, scratch_operands = 0 : i64, tpu.core_type = #tpu.core_type<tc>, window_params = [{transform_indices = @transform_0, window_bounds = array<i64: 8, 128>}, {transform_indices = @transform_1, window_bounds = array<i64: 8, 128>}, {pipeline_mode = #tpu.pipeline_mode<synchronous>, transform_indices = @transform_2, window_bounds = array<i64: 128, 128>}, {pipeline_mode = #tpu.pipeline_mode<synchronous>, transform_indices = @transform_3, window_bounds = array<i64: 128, 128>}, {pipeline_mode = #tpu.pipeline_mode<synchronous>, transform_indices = @transform_4, window_bounds = array<i64: 128, 128>}, {pipeline_mode = #tpu.pipeline_mode<synchronous>, transform_indices = @transform_5, window_bounds = array<i64: 1, 128>}, {pipeline_mode = #tpu.pipeline_mode<synchronous>, transform_indices = @transform_6, window_bounds = array<i64: 1, 128>}, {transform_indices = @transform_7, window_bounds = array<i64: 8, 128>}]} {
    %c0 = arith.constant 0 : index
    %c0_0 = arith.constant 0 : index
    %0 = vector.load %arg1[%c0, %c0_0] : memref<8x128xf32, #tpu.memory_space<vmem>>, vector<8x128xf32>
    %c0_1 = arith.constant 0 : index
    %c0_2 = arith.constant 0 : index
    %1 = vector.load %arg3[%c0_1, %c0_2] : memref<128x128xf32, #tpu.memory_space<vmem>>, vector<128x128xf32>
    %cst = arith.constant dense<0.000000e+00> : vector<8x128xf32>
    %2 = tpu.matmul %0, %1, %cst {dimension_numbers = #tpu.dot_dimension_numbers<[1], [0], [0], [1], [0, 0, 1, 1], [], []>} : vector<8x128xf32>, vector<128x128xf32>, vector<8x128xf32> -> vector<8x128xf32>
    %c0_3 = arith.constant 0 : index
    %c0_4 = arith.constant 0 : index
    %3 = vector.load %arg2[%c0_3, %c0_4] : memref<8x128xf32, #tpu.memory_space<vmem>>, vector<8x128xf32>
    %c0_5 = arith.constant 0 : index
    %c0_6 = arith.constant 0 : index
    %4 = vector.load %arg4[%c0_5, %c0_6] : memref<128x128xf32, #tpu.memory_space<vmem>>, vector<128x128xf32>
    %cst_7 = arith.constant dense<0.000000e+00> : vector<8x128xf32>
    %5 = tpu.matmul %3, %4, %cst_7 {dimension_numbers = #tpu.dot_dimension_numbers<[1], [0], [0], [1], [0, 0, 1, 1], [], []>} : vector<8x128xf32>, vector<128x128xf32>, vector<8x128xf32> -> vector<8x128xf32>
    %6 = arith.addf %2, %5 : vector<8x128xf32>
    %c0_8 = arith.constant 0 : index
    %c0_9 = arith.constant 0 : index
    %7 = vector.load %arg6[%c0_8, %c0_9] : memref<1x128xf32, #tpu.memory_space<vmem>>, vector<1x128xf32>
    %8 = vector.broadcast %7 : vector<1x128xf32> to vector<8x128xf32>
    %9 = arith.addf %6, %8 : vector<8x128xf32>
    %10 = math.tanh %9 : vector<8x128xf32>
    %11 = arith.negf %9 : vector<8x128xf32>
    %12 = math.exp %11 : vector<8x128xf32>
    %cst_10 = arith.constant 1.000000e+00 : f32
    %13 = vector.broadcast %cst_10 : f32 to vector<8x128xf32>
    %14 = arith.addf %13, %12 : vector<8x128xf32>
    %15 = arith.divf %13, %14 : vector<8x128xf32>
    %16 = arith.mulf %10, %15 : vector<8x128xf32>
    %c0_11 = arith.constant 0 : index
    %c0_12 = arith.constant 0 : index
    %17 = vector.load %arg5[%c0_11, %c0_12] : memref<128x128xf32, #tpu.memory_space<vmem>>, vector<128x128xf32>
    %cst_13 = arith.constant dense<0.000000e+00> : vector<8x128xf32>
    %18 = tpu.matmul %16, %17, %cst_13 {dimension_numbers = #tpu.dot_dimension_numbers<[1], [0], [0], [1], [0, 0, 1, 1], [], []>} : vector<8x128xf32>, vector<128x128xf32>, vector<8x128xf32> -> vector<8x128xf32>
    %c0_14 = arith.constant 0 : index
    %c0_15 = arith.constant 0 : index
    %19 = vector.load %arg7[%c0_14, %c0_15] : memref<1x128xf32, #tpu.memory_space<vmem>>, vector<1x128xf32>
    %20 = vector.broadcast %19 : vector<1x128xf32> to vector<8x128xf32>
    %21 = arith.addf %18, %20 : vector<8x128xf32>
    %22 = arith.addf %21, %0 : vector<8x128xf32>
    %cst_16 = arith.constant 0.000000e+00 : f32
    %23 = vector.broadcast %cst_16 : f32 to vector<8x128xf32>
    %24 = arith.cmpf oge, %22, %23 : vector<8x128xf32>
    %cst_17 = arith.constant 2.000000e-01 : f32
    %25 = vector.broadcast %cst_17 : f32 to vector<8x128xf32>
    %26 = arith.mulf %25, %22 : vector<8x128xf32>
    %27 = arith.select %24, %22, %26 : vector<8x128xi1>, vector<8x128xf32>
    %c0_18 = arith.constant 0 : index
    %c0_19 = arith.constant 0 : index
    %28 = vector.load %arg8[%c0_18, %c0_19] : memref<8x128xf32, #tpu.memory_space<vmem>>, vector<8x128xf32>
    tpu.vector_store %arg8[%c0_18, %c0_19], %27 {strides = array<i32>} : memref<8x128xf32, #tpu.memory_space<vmem>>, vector<8x128xf32>,
    return
  }
  func.func @transform_0(%arg0: i32) -> (i32, i32) {
    %c0_i32 = arith.constant 0 : i32
    %c0_i32_0 = arith.constant 0 : i32
    return %arg0, %c0_i32 : i32, i32
  }
  func.func @transform_1(%arg0: i32) -> (i32, i32) {
    %c0_i32 = arith.constant 0 : i32
    %c0_i32_0 = arith.constant 0 : i32
    return %arg0, %c0_i32 : i32, i32
  }
  func.func @transform_2(%arg0: i32) -> (i32, i32) {
    %c0_i32 = arith.constant 0 : i32
    %c0_i32_0 = arith.constant 0 : i32
    %c0_i32_1 = arith.constant 0 : i32
    return %c0_i32, %c0_i32_0 : i32, i32
  }
  func.func @transform_3(%arg0: i32) -> (i32, i32) {
    %c0_i32 = arith.constant 0 : i32
    %c0_i32_0 = arith.constant 0 : i32
    %c0_i32_1 = arith.constant 0 : i32
    return %c0_i32, %c0_i32_0 : i32, i32
  }
  func.func @transform_4(%arg0: i32) -> (i32, i32) {
    %c0_i32 = arith.constant 0 : i32
    %c0_i32_0 = arith.constant 0 : i32
    %c0_i32_1 = arith.constant 0 : i32
    return %c0_i32, %c0_i32_0 : i32, i32
  }
  func.func @transform_5(%arg0: i32) -> (i32, i32) {
    %c0_i32 = arith.constant 0 : i32
    %c0_i32_0 = arith.constant 0 : i32
    %c0_i32_1 = arith.constant 0 : i32
    return %c0_i32, %c0_i32_0 : i32, i32
  }
  func.func @transform_6(%arg0: i32) -> (i32, i32) {
    %c0_i32 = arith.constant 0 : i32
    %c0_i32_0 = arith.constant 0 : i32
    %c0_i32_1 = arith.constant 0 : i32
    return %c0_i32, %c0_i32_0 : i32, i32
  }
  func.func @transform_7(%arg0: i32) -> (i32, i32) {
    %c0_i32 = arith.constant 0 : i32
    %c0_i32_0 = arith.constant 0 : i32
    return %arg0, %c0_i32 : i32, i32
  }
}

</mosaic_0001>

<bundles_post_ra>
// kernel: tpu_custom_call.1
= control target key start
LH: loop header
LB: loop body
LE: loop exit
PB: predicated region body
PF: predicated region fallthrough
CT: control target
= control target key end

     0   :  { %12 = vsyncpa [#allocation3], 0  ;;  %s956_s0 = inlined_call_operand.hbm [shape: f32[8,128], index: 0, kind: input, shape index: {}]   ;;  %s957_s1 = inlined_call_operand.hbm [shape: f32[8,128], index: 1, kind: input, shape index: {}]   ;;  %s958_s2 = inlined_call_operand.hbm [shape: f32[128,128], index: 2, kind: input, shape index: {}]   ;;  %s959_s3 = inlined_call_operand.hbm [shape: f32[128,128], index: 3, kind: input, shape index: {}]   ;;  %s960_s4 = inlined_call_operand.hbm [shape: f32[128,128], index: 4, kind: input, shape index: {}]   ;;  %s961_s5 = inlined_call_operand.vmem [shape: f32[1,128], index: 5, kind: input, shape index: {}]   ;;  %s962_s6 = inlined_call_operand.vmem [shape: f32[1,128], index: 6, kind: input, shape index: {}]   ;;  %s963_s7 = inlined_call_operand.hbm [shape: f32[8,128], index: 7, kind: output, shape index: {}]  }
   0x1   :  { %13 = vsyncpa [#allocation6], 0 }
   0x2   :  { %14 = vsyncpa [#allocation9], 0 }
   0x3   :  { %15 = vsyncpa [#allocation4], 0  ;;  %s784_s24 = smov [#allocation5]   ;;  %s644_s28 = scalar_lea.hbm %s957_s1, 128 }
   0x4   :  { %s32_s25 = sshll.u32 %s784_s24, 4  ;;  %p645_p0 = scmp.ne.s32.totalorder %s957_s1, %s644_s28  ;;  %s33_s25 = int_to_ptr.vmem [resolvable:$true] %s32_s25 }
   0x5   :  { %p648_p1 = scmp.lt.u32.totalorder %s644_s28, %s957_s1 }
   0x7   :  { %p650_p2 = pnand %p648_p1, %p645_p0 }
   0x9   :  { %653 = shalt.err (!%p650_p2)
}
   0xa   :  { %s654_s10 = scalar_lea.vmem %s33_s25, 128  ;;  %p659_p4 = scmp.lt.s32.totalorder %s33_s25, %s33_s25 }
   0xb   :  { %p655_p3 = scmp.ne.s32.totalorder %s33_s25, %s654_s10  ;;  %p660_p5 = scmp.lt.s32.totalorder %s654_s10, %s654_s10 }
   0xd   :  { %p661_p6 = por %p660_p5, %p659_p4 }
   0xf   :  { %p662_p7 = pnand %p661_p6, %p655_p3 }
  0x11   :  { %665 = shalt.err (!%p662_p7)
}
  0x12   :  { %35 = dma.hbm_to_vmem [thread:$0]  %s957_s1, 128, %s33_s25, [#allocation6]  }
  0x13   :  { %s785_s13 = smov [#allocation8]   ;;  %s786_s15 = smov [#allocation2]  }
  0x14   :  { %s53_s14 = sshll.u32 %s785_s13, 4  ;;  %s22_s16 = sshll.u32 %s786_s15, 4  ;;  %s54_s14 = int_to_ptr.vmem [resolvable:$true] %s53_s14  ;;  %s23_s16 = int_to_ptr.vmem [resolvable:$true] %s22_s16 }
  0x15   :  { %s666_s19 = scalar_lea.hbm %s959_s3, 2048 }
  0x16   :  { %p667_p8 = scmp.ne.s32.totalorder %s959_s3, %s666_s19  ;;  %p670_p9 = scmp.lt.u32.totalorder %s666_s19, %s959_s3 }
  0x18   :  { %p672_p10 = pnand %p670_p9, %p667_p8 }
  0x1a   :  { %675 = shalt.err (!%p672_p10)
}
  0x1b   :  { %s676_s1 = scalar_lea.vmem %s54_s14, 2048  ;;  %p681_p12 = scmp.lt.s32.totalorder %s54_s14, %s54_s14 }
  0x1c   :  { %p677_p11 = scmp.ne.s32.totalorder %s54_s14, %s676_s1  ;;  %p682_p13 = scmp.lt.s32.totalorder %s676_s1, %s676_s1 }
  0x1e   :  { %p683_p0 = por %p682_p13, %p681_p12 }
  0x20   :  { %p684_p1 = pnand %p683_p0, %p677_p11 }
  0x22   :  { %687 = shalt.err (!%p684_p1)
}
  0x23   :  { %s787_s24 = smov 128   ;;  %s788_s25 = smov 8  }
  0x24   :  { %59 = dma.hbm_to_vmem [thread:$0]  %s959_s3, 2048, %s54_s14, [#allocation9], %s787_s24, %s787_s24, %s788_s25  }
  0x25   :  { %s688_s30 = scalar_lea.hbm %s956_s0, 128 }
  0x26   :  { %p689_p2 = scmp.ne.s32.totalorder %s956_s0, %s688_s30  ;;  %p692_p3 = scmp.lt.u32.totalorder %s688_s30, %s956_s0 }
  0x28   :  { %p694_p4 = pnand %p692_p3, %p689_p2 }
  0x2a   :  { %697 = shalt.err (!%p694_p4)
}
  0x2b   :  { %s698_s12 = scalar_lea.vmem %s23_s16, 128  ;;  %p703_p6 = scmp.lt.s32.totalorder %s23_s16, %s23_s16 }
  0x2c   :  { %p699_p5 = scmp.ne.s32.totalorder %s23_s16, %s698_s12  ;;  %p704_p7 = scmp.lt.s32.totalorder %s698_s12, %s698_s12 }
  0x2e   :  { %p705_p8 = por %p704_p7, %p703_p6 }
  0x30   :  { %p706_p9 = pnand %p705_p8, %p699_p5 }
  0x32   :  { %709 = shalt.err (!%p706_p9)
}
  0x33   :  { %25 = dma.hbm_to_vmem [thread:$0]  %s956_s0, 128, %s23_s16, [#allocation3]  }
  0x34   :  { %s789_s14 = smov [#allocation7]   ;;  %s790_s17 = smov [#allocation10]  }
  0x35   :  { %s41_s15 = sshll.u32 %s789_s14, 4  ;;  %s65_s18 = sshll.u32 %s790_s17, 4  ;;  %s42_s15 = int_to_ptr.vmem [resolvable:$true] %s41_s15  ;;  %s66_s18 = int_to_ptr.vmem [resolvable:$true] %s65_s18 }
  0x36   :  { %s710_s21 = scalar_lea.hbm %s958_s2, 2048 }
  0x37   :  { %p711_p10 = scmp.ne.s32.totalorder %s958_s2, %s710_s21  ;;  %p714_p11 = scmp.lt.u32.totalorder %s710_s21, %s958_s2 }
  0x39   :  { %p716_p12 = pnand %p714_p11, %p711_p10 }
  0x3b   :  { %719 = shalt.err (!%p716_p12)
}
  0x3c   :  { %s720_s0 = scalar_lea.vmem %s42_s15, 2048  ;;  %p725_p0 = scmp.lt.s32.totalorder %s42_s15, %s42_s15 }
  0x3d   :  { %p721_p13 = scmp.ne.s32.totalorder %s42_s15, %s720_s0  ;;  %p726_p1 = scmp.lt.s32.totalorder %s720_s0, %s720_s0 }
  0x3f   :  { %p727_p2 = por %p726_p1, %p725_p0 }
  0x41   :  { %p728_p3 = pnand %p727_p2, %p721_p13 }
  0x43   :  { %731 = shalt.err (!%p728_p3)
}
  0x44   :  { %47 = dma.hbm_to_vmem [thread:$0]  %s958_s2, 2048, %s42_s15, [#allocation6], %s787_s24, %s787_s24, %s788_s25  }
  0x45   :  { %s732_s30 = scalar_lea.hbm %s960_s4, 2048 }
  0x46   :  { %p733_p4 = scmp.ne.s32.totalorder %s960_s4, %s732_s30  ;;  %p736_p5 = scmp.lt.u32.totalorder %s732_s30, %s960_s4 }
  0x48   :  { %p738_p6 = pnand %p736_p5, %p733_p4 }
  0x4a   :  { %741 = shalt.err (!%p738_p6)
}
  0x4b   :  { %s742_s12 = scalar_lea.vmem %s66_s18, 2048  ;;  %p747_p8 = scmp.lt.s32.totalorder %s66_s18, %s66_s18 }
  0x4c   :  { %p743_p7 = scmp.ne.s32.totalorder %s66_s18, %s742_s12  ;;  %p748_p9 = scmp.lt.s32.totalorder %s742_s12, %s742_s12 }
  0x4e   :  { %p749_p10 = por %p748_p9, %p747_p8 }
  0x50   :  { %p750_p11 = pnand %p749_p10, %p743_p7 }
  0x52   :  { %753 = shalt.err (!%p750_p11)
}
  0x53   :  { %71 = dma.hbm_to_vmem [thread:$0]  %s960_s4, 2048, %s66_s18, [#allocation9], %s787_s24, %s787_s24, %s788_s25  }
  0x54   :  { %776 = dma.done.wait [#allocation3], 128  }
  0x55   :  { %777 = vsyncadd [#allocation3], 4294967168 }
  0x56   :  { %778 = dma.done.wait [#allocation6], 2176  }
  0x57   :  { %779 = vsyncadd [#allocation6], 4294965120 }
  0x58   :  { %780 = dma.done.wait [#allocation9], 4096  }
  0x59   :  { %781 = vsyncadd [#allocation9], 4294963200  ;;  %v791_v0 = vmov 0.0|0.0   ;;  %vm792_vm0 = vmmov 0   ;;  %v793_v1 = vmov 0.0   ;;  %v109_v2 = vld [vmem:[#allocation8] sm:$0xff] }
  0x5a   :  { %555 = vmatprep.subr.bf16.mxu0 %v791_v0  ;;  %579 = vmatprep.subr.bf16.mxu1 %v791_v0  ;;  %v110_v3 = vld [vmem:[#allocation8 + $0x8] sm:$0xff]  ;;  %v92_v4 = vld [vmem:[#allocation7] sm:$0xff]  ;;  %v111_v7 = vld [vmem:[#allocation8 + $0x10] sm:$0xff] }
  0x5b   :  { %482 = vmatprep.mubr.msk.f32.mxu0 %vm792_vm0, %v793_v1  ;;  %517 = vmatprep.mubr.msk.f32.mxu1 %vm792_vm0, %v793_v1  ;;  %v556_v5 = vpack.c.bf16 %v110_v3, %v109_v2  ;;  %v93_v6 = vld [vmem:[#allocation7 + $0x8] sm:$0xff]  ;;  %v112_v8 = vld [vmem:[#allocation8 + $0x18] sm:$0xff]  ;;  %v94_v10 = vld [vmem:[#allocation7 + $0x10] sm:$0xff] }
  0x5c   :  { %v580_v9 = vpack.c.bf16 %v93_v6, %v92_v4  ;;  %v95_v11 = vld [vmem:[#allocation7 + $0x18] sm:$0xff]  ;;  %v559_v12 = vpack.c.bf16 %v112_v8, %v111_v7  ;;  %v113_v14 = vld [vmem:[#allocation8 + $0x20] sm:$0xff]  ;;  %v114_v15 = vld [vmem:[#allocation8 + $0x28] sm:$0xff] }
  0x5d   :  { %557 = vmatpush3.bf16.msra.mxu0 %v556_v5  ;;  %v583_v13 = vpack.c.bf16 %v95_v11, %v94_v10  ;;  %v96_v16 = vld [vmem:[#allocation7 + $0x20] sm:$0xff]  ;;  %v97_v17 = vld [vmem:[#allocation7 + $0x28] sm:$0xff]  ;;  %v562_v18 = vpack.c.bf16 %v114_v15, %v113_v14  ;;  %v115_v20 = vld [vmem:[#allocation8 + $0x30] sm:$0xff] }
  0x5e   :  { %581 = vmatpush3.bf16.msra.mxu1 %v580_v9  ;;  %558 = vmatprep.subr.bf16.mxu0 %v791_v0  ;;  %v586_v19 = vpack.c.bf16 %v97_v17, %v96_v16  ;;  %v116_v21 = vld [vmem:[#allocation8 + $0x38] sm:$0xff]  ;;  %v98_v22 = vld [vmem:[#allocation7 + $0x30] sm:$0xff]  ;;  %v117_v26 = vld [vmem:[#allocation8 + $0x40] sm:$0xff] }
  0x5f   :  { %582 = vmatprep.subr.bf16.mxu1 %v791_v0  ;;  %v99_v23 = vld [vmem:[#allocation7 + $0x38] sm:$0xff]  ;;  %v565_v24 = vpack.c.bf16 %v116_v21, %v115_v20  ;;  %v118_v27 = vld [vmem:[#allocation8 + $0x48] sm:$0xff]  ;;  %v100_v28 = vld [vmem:[#allocation7 + $0x40] sm:$0xff] }
  0x60   :  { %v589_v25 = vpack.c.bf16 %v99_v23, %v98_v22  ;;  %v101_v29 = vld [vmem:[#allocation7 + $0x48] sm:$0xff]  ;;  %v568_v30 = vpack.c.bf16 %v118_v27, %v117_v26  ;;  %v119_v32 = vld [vmem:[#allocation8 + $0x50] sm:$0xff]  ;;  %v120_v33 = vld [vmem:[#allocation8 + $0x58] sm:$0xff] }
  0x61   :  { %560 = vmatpush3.bf16.msra.mxu0 %v559_v12  ;;  %v592_v31 = vpack.c.bf16 %v101_v29, %v100_v28  ;;  %v102_v34 = vld [vmem:[#allocation7 + $0x50] sm:$0xff]  ;;  %v103_v35 = vld [vmem:[#allocation7 + $0x58] sm:$0xff]  ;;  %v571_v36 = vpack.c.bf16 %v120_v33, %v119_v32  ;;  %v121_v38 = vld [vmem:[#allocation8 + $0x60] sm:$0xff] }
  0x62   :  { %584 = vmatpush3.bf16.msra.mxu1 %v583_v13  ;;  %561 = vmatprep.subr.bf16.mxu0 %v791_v0  ;;  %v595_v37 = vpack.c.bf16 %v103_v35, %v102_v34  ;;  %v122_v39 = vld [vmem:[#allocation8 + $0x68] sm:$0xff]  ;;  %v104_v40 = vld [vmem:[#allocation7 + $0x60] sm:$0xff]  ;;  %v123_v44 = vld [vmem:[#allocation8 + $0x70] sm:$0xff] }
  0x63   :  { %585 = vmatprep.subr.bf16.mxu1 %v791_v0  ;;  %v105_v41 = vld [vmem:[#allocation7 + $0x68] sm:$0xff]  ;;  %v574_v42 = vpack.c.bf16 %v122_v39, %v121_v38  ;;  %v124_v45 = vld [vmem:[#allocation8 + $0x78] sm:$0xff]  ;;  %v106_v46 = vld [vmem:[#allocation7 + $0x70] sm:$0xff] }
  0x64   :  { %v598_v43 = vpack.c.bf16 %v105_v41, %v104_v40  ;;  %v107_v47 = vld [vmem:[#allocation7 + $0x78] sm:$0xff]  ;;  %v577_v48 = vpack.c.bf16 %v124_v45, %v123_v44  ;;  %v924_v51 = vld [vmem:[#allocation2] sm:$0xff]  ;;  %v281_v52 = vld [vmem:[#allocation10] sm:$0xff] }
  0x65   :  { %563 = vmatpush3.bf16.msra.mxu0 %v562_v18  ;;  %v601_v49 = vpack.c.bf16 %v107_v47, %v106_v46  ;;  %v108_v50 = vld [vmem:[#allocation5] sm:$0xff]  ;;  %v282_v53 = vld [vmem:[#allocation10 + $0x8] sm:$0xff]  ;;  %v283_v55 = vld [vmem:[#allocation10 + $0x10] sm:$0xff] }
  0x66   :  { %587 = vmatpush3.bf16.msra.mxu1 %v586_v19  ;;  %564 = vmatprep.subr.bf16.mxu0 %v791_v0  ;;  %v604_v54 = vpack.c.bf16 %v282_v53, %v281_v52  ;;  %v284_v56 = vld [vmem:[#allocation10 + $0x18] sm:$0xff]  ;;  %v285_v58 = vld [vmem:[#allocation10 + $0x20] sm:$0xff]  ;;  %v286_v59 = vld [vmem:[#allocation10 + $0x28] sm:$0xff] }
  0x67   :  { %588 = vmatprep.subr.bf16.mxu1 %v791_v0  ;;  %v607_v57 = vpack.c.bf16 %v284_v56, %v283_v55  ;;  %v610_v60 = vpack.c.bf16 %v286_v59, %v285_v58  ;;  %v287_v61 = vld [vmem:[#allocation10 + $0x30] sm:$0xff]  ;;  %v288_v62 = vld [vmem:[#allocation10 + $0x38] sm:$0xff]  ;;  %v290_v2 = vld [vmem:[#allocation10 + $0x48] sm:$0xff] }
  0x68   :  { %v613_v63 = vpack.c.bf16 %v288_v62, %v287_v61  ;;  %v291_v4 = vld [vmem:[#allocation10 + $0x50] sm:$0xff]  ;;  %v292_v5 = vld [vmem:[#allocation10 + $0x58] sm:$0xff]  ;;  %v293_v7 = vld [vmem:[#allocation10 + $0x60] sm:$0xff] }
  0x69   :  { %566 = vmatpush3.bf16.msra.mxu0 %v565_v24  ;;  %v619_v6 = vpack.c.bf16 %v292_v5, %v291_v4  ;;  %v294_v8 = vld [vmem:[#allocation10 + $0x68] sm:$0xff]  ;;  %v295_v10 = vld [vmem:[#allocation10 + $0x70] sm:$0xff]  ;;  %v296_v11 = vld [vmem:[#allocation10 + $0x78] sm:$0xff] }
  0x6a   :  { %590 = vmatpush3.bf16.msra.mxu1 %v589_v25  ;;  %567 = vmatprep.subr.bf16.mxu0 %v791_v0  ;;  %v622_v9 = vpack.c.bf16 %v294_v8, %v293_v7  ;;  %v625_v12 = vpack.c.bf16 %v296_v11, %v295_v10  ;;  %v396_v15 = vld [vmem:[%s961_s5] ss:$0 sm:$0xff]  ;;  %s794_s5 = smov [#allocation11]  }
  0x6b   :  { %591 = vmatprep.subr.bf16.mxu1 %v791_v0  ;;  %v398_v25 = vld [vmem:[%s962_s6] ss:$0 sm:$0xff]  ;;  %s385_s14 = sshll.u32 %s794_s5, 4  ;;  %s386_s14 = int_to_ptr.vmem [resolvable:$true] %s385_s14 }
  0x6c   :  { %s754_s15 = scalar_lea.vmem %s386_s14, 128  ;;  %p759_p13 = scmp.lt.s32.totalorder %s386_s14, %s386_s14 }
  0x6d   :  { %569 = vmatpush3.bf16.msra.mxu0 %v568_v30  ;;  %p755_p12 = scmp.ne.s32.totalorder %s386_s14, %s754_s15  ;;  %p760_p0 = scmp.lt.s32.totalorder %s754_s15, %s754_s15 }
  0x6e   :  { %593 = vmatpush3.bf16.msra.mxu1 %v592_v31  ;;  %570 = vmatprep.subr.bf16.mxu0 %v791_v0 }
  0x6f   :  { %594 = vmatprep.subr.bf16.mxu1 %v791_v0  ;;  %p761_p1 = por %p760_p0, %p759_p13 }
  0x71   :  { %572 = vmatpush3.bf16.msra.mxu0 %v571_v36  ;;  %p762_p2 = pnand %p761_p1, %p755_p12 }
  0x72   :  { %596 = vmatpush3.bf16.msra.mxu1 %v595_v37  ;;  %573 = vmatprep.subr.bf16.mxu0 %v791_v0 }
  0x73   :  { %597 = vmatprep.subr.bf16.mxu1 %v791_v0 }
  0x75   :  { %575 = vmatpush3.bf16.msra.mxu0 %v574_v42 }
  0x76   :  { %599 = vmatpush3.bf16.msra.mxu1 %v598_v43  ;;  %576 = vmatprep.subr.bf16.mxu0 %v791_v0 }
  0x77   :  { %600 = vmatprep.subr.bf16.mxu1 %v791_v0 }
  0x79   :  { %578 = vmatpush3.bf16.msra.mxu0 %v577_v48 }
  0x7a   :  { %602 = vmatpush3.bf16.msra.mxu1 %v601_v49  ;;  %603 = vmatprep.subr.bf16.mxu0 %v791_v0 }
  0x7c   :  { %483 = vmatmul.mubr.f32.vlgmr.msra.gmra.mrb[0].mxu0 %v108_v50 }
  0x7d   :  { %518 = vmatmul.mubr.f32.vlgmr.msra.gmra.mrb[0].mxu1 %v924_v51  ;;  %552 = vmatprep.mubr.msk.f32.mxu0 %vm792_vm0, %v793_v1  ;;  %v289_v1 = vld [vmem:[#allocation10 + $0x40] sm:$0xff] }
  0x7e   :  { %605 = vmatpush3.bf16.msra.mxu0 %v604_v54  ;;  %v616_v3 = vpack.c.bf16 %v290_v2, %v289_v1 }
  0x7f   :  { %606 = vmatprep.subr.bf16.mxu0 %v791_v0 }
  0x82   :  { %608 = vmatpush3.bf16.msra.mxu0 %v607_v57 }
  0x83   :  { %609 = vmatprep.subr.bf16.mxu0 %v791_v0 }
  0x86   :  { %611 = vmatpush3.bf16.msra.mxu0 %v610_v60 }
  0x87   :  { %612 = vmatprep.subr.bf16.mxu0 %v791_v0 }
  0x8a   :  { %614 = vmatpush3.bf16.msra.mxu0 %v613_v63 }
  0x8b   :  { %615 = vmatprep.subr.bf16.mxu0 %v791_v0 }
  0x8e   :  { %617 = vmatpush3.bf16.msra.mxu0 %v616_v3 }
  0x8f   :  { %618 = vmatprep.subr.bf16.mxu0 %v791_v0 }
  0x92   :  { %620 = vmatpush3.bf16.msra.mxu0 %v619_v6 }
  0x93   :  { %621 = vmatprep.subr.bf16.mxu0 %v791_v0 }
  0x96   :  { %623 = vmatpush3.bf16.msra.mxu0 %v622_v9 }
  0x97   :  { %624 = vmatprep.subr.bf16.mxu0 %v791_v0 }
  0x9a   :  { %626 = vmatpush3.bf16.msra.mxu0 %v625_v12 }
 0x14f   :  { %v191_v13 = vpop.f32.mrb[0].mxu0 }
 0x150   :  { %v261_v14 = vpop.f32.mrb[0].mxu1  ;;  %v484_v16 = vpop.f32.mrb[1].mxu0 }
 0x151   :  { %v262_v17 = vadd.f32 %v261_v14, %v191_v13  ;;  %v519_v18 = vpop.f32.mrb[1].mxu1 }
 0x153   :  { %v272_v19 = vadd.f32 %v396_v15, %v262_v17 }
 0x155   :  { %v397_v20 = vmul.f32 -1.442695, %v272_v19 }
 0x157   :  { %638 = vpow2.f32 %v397_v20 }
 0x158   :  { %640 = vtanh.f32 %v272_v19 }
 0x161   :  { %v639_v21 = vpop.eup %638 }
 0x162   :  { %v277_v22 = vadd.f32 1.0, %v639_v21  ;;  %v641_v23 = vpop.eup %640 }
 0x164   :  { %642 = vrcp.f32 %v277_v22 }
 0x16e   :  { %v643_v24 = vpop.eup %642 }
 0x16f   :  { %v280_v0 = vmul.f32 %v643_v24, %v641_v23 }
 0x171   :  { %553 = vmatmul.mubr.f32.vlgmr.msra.gmra.mrb[2].mxu0 %v280_v0 }
 0x244   :  { %v370_v26 = vpop.f32.mrb[2].mxu0 }
 0x245   :  { %v371_v27 = vadd.f32 %v398_v25, %v370_v26  ;;  %v554_v28 = vpop.f32.mrb[3].mxu0 }
 0x247   :  { %v374_v29 = vadd.f32 %v371_v27, %v924_v51 }
 0x249   :  { %v376_v30 = vmul.f32 0.2, %v374_v29  ;;  %vm375_vm1 = vcmp.ge.f32.partialorder %v374_v29, 0.0 }
 0x24b   :  { %v377_v31 = vsel %vm375_vm1, %v374_v29, %v376_v30 }
 0x24c   :  { %378 = vst [vmem:[#allocation11] sm:$0xff] %v377_v31 }
 0x24d   :  { %765 = shalt.err (!%p762_p2)
}
 0x24e   :  { %s766_s18 = scalar_lea.hbm %s963_s7, 128 }
 0x24f   :  { %p767_p3 = scmp.ne.s32.totalorder %s963_s7, %s766_s18  ;;  %p770_p4 = scmp.lt.u32.totalorder %s766_s18, %s963_s7 }
 0x251   :  { %p772_p5 = pnand %p770_p4, %p767_p3 }
 0x253   :  { %775 = shalt.err (!%p772_p5)
}
 0x254   :  { %388 = dma.vmem_to_hbm [thread:$0]  %s386_s14, 128, %s963_s7, [#allocation4]  }
 0x255   :  { %782 = dma.done.wait [#allocation4], 128  }
 0x256   :  { %783 = vsyncadd [#allocation4], 4294967168 }
 0x257   :  { %392 = vsyncpa [#allocation3], 1 }
 0x258   :  { %393 = vsyncpa [#allocation6], 1 }
 0x259   :  { %394 = vsyncpa [#allocation9], 1 }
 0x25a   :  { %395 = vsyncpa [#allocation4], 1 }

</bundles_post_ra>
